<compile_context>
chip_gen: v7x
topology: tpu7x:2x2x1
jax: 0.10.0
libtpu: 0.0.40
codegen_flags: <defaults>
</compile_context>

<pallas_src>
import functools

import jax
import jax.numpy as jnp
from jax.experimental import pallas as pl
from jax.experimental.pallas import tpu as pltpu


# ---------------------------------------------------------------------------
# Kernel
# ---------------------------------------------------------------------------
def _gem_kernel(p_ref, x_ref, o_ref, acc_ref, *, eps, inv_hw, compute_dtype):
    """One grid step.

    p_ref   : (1,) f32 scalar-prefetch (SMEM) — learnable exponent p
    x_ref   : (b_t, c_t, hw_t) input tile (VMEM)
    o_ref   : (b_t, 1, c_t) output tile (VMEM), written on the last spatial step
    acc_ref : (b_t, c_t) f32 VMEM scratch — running sum of x**p over H*W
    """
    s = pl.program_id(2)

    @pl.when(s == 0)
    def _init():
        acc_ref[...] = jnp.zeros_like(acc_ref)

    # clamp, then x**p == exp(p * log(x))   (x >= eps > 0: EUP transcendental path)
    x = jnp.maximum(x_ref[...].astype(compute_dtype),
                    jnp.asarray(eps, dtype=compute_dtype))
    p = p_ref[0].astype(compute_dtype)
    xp = jnp.exp(p * jnp.log(x))                                   # (b_t, c_t, hw_t)

    # Accumulate the spatial sum in f32 regardless of the compute dtype.
    acc_ref[...] += jnp.sum(xp, axis=-1, dtype=jnp.float32)        # (b_t, c_t)

    @pl.when(s == pl.num_programs(2) - 1)
    def _finalize():
        p32 = p_ref[0]
        inv_p = 1.0 / p32
        mean_p = acc_ref[...] * inv_hw                             # (b_t, c_t)
        gem = jnp.exp(jnp.log(mean_p) * inv_p)                     # mean**(1/p)
        o_ref[...] = gem[:, None, :].astype(o_ref.dtype)           # (b_t, 1, c_t)


# ---------------------------------------------------------------------------
# Generation-aware policy helpers
# ---------------------------------------------------------------------------
def _device_kind():
    try:
        return jax.devices()[0].device_kind.lower()
    except Exception:
        return ""


def _supports_bf16_eup():
    # v5e's EUP/VPU have no bf16 path; only enable bf16 transcendentals on v6e/v7x.
    kind = _device_kind()
    return ("v6" in kind) or ("v7" in kind)


def _vmem_policy():
    """Return (block_budget_bytes, vmem_limit_bytes) tuned per TPU generation."""
    vmem_bytes = None
    try:
        vmem_bytes = int(pltpu.get_tpu_info().vmem_capacity_bytes)
    except Exception:
        vmem_bytes = None
    if vmem_bytes is None:
        vmem_bytes = 64 * 1024 * 1024 if "v7" in _device_kind() else 128 * 1024 * 1024
    if vmem_bytes <= 64 * 1024 * 1024:
        # v7x-class (64 MiB / TensorCore): smaller blocks, generous headroom.
        return 6 * 1024 * 1024, 40 * 1024 * 1024
    # v5e / v6e (128 MiB physical): larger DMA blocks amortize ~0.35us/step overhead.
    return 16 * 1024 * 1024, 64 * 1024 * 1024


# ---------------------------------------------------------------------------
# Tile selection
# ---------------------------------------------------------------------------
def _largest_div_multiple(n, base, pred):
    """Largest divisor of n that is a multiple of `base` and satisfies pred(d)."""
    for k in range(n // base, 0, -1):
        d = k * base
        if n % d == 0 and pred(d):
            return d
    return None


def _pick_tiles(B, C, HW, in_itemsize, compute_itemsize, budget_bytes):
    """Pick (b_t, c_t, hw_t).

    The budget accounts for the double-buffered input block (2x) plus ~two
    full-chunk elementwise temporaries in the compute dtype (the clamped x and
    exp(p*log(x))), so real VMEM use stays under vmem_limit_bytes.
    """
    per_elem = 2 * in_itemsize + 2 * compute_itemsize

    def fits(bt, ct, hwt):
        return bt * ct * hwt * per_elem <= budget_bytes

    # Channel tile: prefer full C (lane-dense output store also when C < 128 or
    # C is not 128-divisible), otherwise a 128-multiple divisor of C.
    c_candidates = [C]
    if C % 128 == 0:
        for k in range(C // 128, 0, -1):
            d = k * 128
            if C % d == 0 and d not in c_candidates:
                c_candidates.append(d)

    c_t = hw_t = None
    for c in c_candidates:
        if fits(1, c, HW):
            c_t, hw_t = c, HW
            break
        if HW % 128 == 0:
            d = _largest_div_multiple(HW, 128, lambda h: fits(1, c, h))
            if d is not None:
                c_t, hw_t = c, d
                break
    if c_t is None:
        # TODO(synk): mask/pad the spatial remainder so a huge, non-128-divisible
        # H*W can still be chunked; today this oversized block may spill.
        c_t, hw_t = c_candidates[-1], HW

    # Batch tile: pack as many batch rows per step as still fit the budget.
    b_t = 1
    for cand in range(1, B + 1):
        if B % cand == 0 and fits(cand, c_t, hw_t):
            b_t = cand

    # Minimum of 2 steps along the "parallel" axes: keeps both v7x TensorCores
    # busy and gives the BlockSpec pipeline something to prefetch.
    if (B // b_t) * (C // c_t) < 2:
        if B >= 2:
            for cand in range(B // 2, 0, -1):
                if B % cand == 0:
                    b_t = cand
                    break
        else:
            for c in c_candidates:
                if c <= C // 2:
                    c_t = c
                    break

    return b_t, c_t, hw_t


# ---------------------------------------------------------------------------
# Wrapper
# ---------------------------------------------------------------------------
def gem(x, p, eps=1e-6, bf16_math=None):
    """GeM pooling forward. x: (B, C, H, W), p: learnable scalar -> (B, C, 1, 1)."""
    B, C, H, W = x.shape
    HW = H * W

    # bf16 transcendental path (~2x EUP throughput, halved vreg/VMEM pressure)
    # only for bf16 inputs on chips with a bf16 EUP (v6e/v7x); ~1e-2 rel error.
    if bf16_math is None:
        bf16_math = (x.dtype == jnp.bfloat16) and _supports_bf16_eup()
    compute_dtype = jnp.bfloat16 if bf16_math else jnp.float32
    compute_itemsize = jnp.dtype(compute_dtype).itemsize

    block_budget, vmem_limit = _vmem_policy()
    b_t, c_t, hw_t = _pick_tiles(B, C, HW, x.dtype.itemsize, compute_itemsize,
                                 block_budget)
    grid = (B // b_t, C // c_t, HW // hw_t)

    # Flatten spatial dims (free: H, W are contiguous in NCHW) so the full
    # H*W row sits on the 128-lane axis.
    x3 = x.reshape(B, C, HW)
    p_arr = jnp.asarray(p, dtype=jnp.float32).reshape(1)

    kernel = functools.partial(_gem_kernel, eps=float(eps), inv_hw=1.0 / HW,
                               compute_dtype=compute_dtype)

    out = pl.pallas_call(
        kernel,
        out_shape=jax.ShapeDtypeStruct((B, 1, C), x.dtype),
        grid_spec=pltpu.PrefetchScalarGridSpec(
            num_scalar_prefetch=1,                 # p -> SMEM, canonical scalar path
            grid=grid,
            in_specs=[
                # NOTE: pipeline_mode=pl.Buffered(3) on this spec is a further
                # lever for HBM-bound v5e once block size is maxed out.
                pl.BlockSpec((b_t, c_t, hw_t), lambda b, c, s, p: (b, c, s)),
            ],
            out_specs=pl.BlockSpec((b_t, 1, c_t), lambda b, c, s, p: (b, 0, c)),
            scratch_shapes=[pltpu.VMEM((b_t, c_t), jnp.float32)],
        ),
        compiler_params=pltpu.CompilerParams(
            dimension_semantics=("parallel", "parallel", "arbitrary"),
            vmem_limit_bytes=vmem_limit,
        ),
    )(p_arr, x3)

    return out.reshape(B, C, 1, 1)


if __name__ == "__main__":
    key = jax.random.PRNGKey(0)
    x = jax.random.normal(key, (2, 4, 16, 16), dtype=jnp.float32)
    p = 3.0
    eps = 1e-6

    out = gem(x, p, eps)
    out = jax.block_until_ready(out)

    # Reference (plain JAX), same math as the PyTorch module.
    xc = jnp.maximum(x, eps)
    ref = jnp.mean(xc ** p, axis=(-2, -1), keepdims=True) ** (1.0 / p)

    assert out.shape == (2, 4, 1, 1), out.shape
    assert jnp.allclose(out, ref, atol=1e-4, rtol=1e-4), float(
        jnp.max(jnp.abs(out - ref)))

    print("KERNEL_OK")
</pallas_src>

<mosaic_0001>
module attributes {stable_mosaic.version = 11 : i64} {
  func.func @_gem_kernel(%arg0: i32, %arg1: i32, %arg2: i32, %arg3: memref<1xf32, #tpu.memory_space<smem>>, %arg4: memref<1x4x256xf32, #tpu.memory_space<vmem>>, %arg5: memref<1x1x4xf32, #tpu.memory_space<vmem>>, %arg6: memref<1x4xf32, #tpu.memory_space<vmem>>) attributes {dimension_semantics = [#tpu.dimension_semantics<parallel>, #tpu.dimension_semantics<parallel>, #tpu.dimension_semantics<arbitrary>], iteration_bounds = array<i64: 2, 1, 1>, scalar_prefetch = 1 : i64, scratch_operands = 1 : i64, tpu.core_type = #tpu.core_type<tc>, window_params = [{transform_indices = @transform_0, window_bounds = array<i64: 1, 4, 256>}, {transform_indices = @transform_1, window_bounds = array<i64: 1, 1, 4>}]} {
    %c0_i32 = arith.constant 0 : i32
    %0 = arith.cmpi eq, %arg2, %c0_i32 : i32
    %1 = arith.extui %0 : i1 to i32
    %c0_i32_0 = arith.constant 0 : i32
    %2 = arith.cmpi ne, %1, %c0_i32_0 : i32
    scf.if %2 {
      %cst_11 = arith.constant 0.000000e+00 : f32
      %18 = vector.broadcast %cst_11 : f32 to vector<1x4xf32>
      %c0_12 = arith.constant 0 : index
      %c0_13 = arith.constant 0 : index
      %19 = vector.load %arg6[%c0_12, %c0_13] : memref<1x4xf32, #tpu.memory_space<vmem>>, vector<1x4xf32>
      tpu.vector_store %arg6[%c0_12, %c0_13], %18 {strides = array<i32>} : memref<1x4xf32, #tpu.memory_space<vmem>>, vector<1x4xf32>,
    } else {
    }
    %c0 = arith.constant 0 : index
    %c0_1 = arith.constant 0 : index
    %c0_2 = arith.constant 0 : index
    %3 = vector.load %arg4[%c0, %c0_1, %c0_2] : memref<1x4x256xf32, #tpu.memory_space<vmem>>, vector<1x4x256xf32>
    %cst = arith.constant 9.99999997E-7 : f32
    %4 = vector.broadcast %cst : f32 to vector<1x4x256xf32>
    %5 = arith.maximumf %3, %4 : vector<1x4x256xf32>
    %c0_3 = arith.constant 0 : index
    %6 = memref.load %arg3[%c0_3] : memref<1xf32, #tpu.memory_space<smem>>
    %7 = math.log %5 : vector<1x4x256xf32>
    %8 = vector.broadcast %6 : f32 to vector<1x4x256xf32>
    %9 = arith.mulf %8, %7 : vector<1x4x256xf32>
    %10 = math.exp %9 : vector<1x4x256xf32>
    %c0_4 = arith.constant 0 : index
    %c0_5 = arith.constant 0 : index
    %11 = vector.load %arg6[%c0_4, %c0_5] : memref<1x4xf32, #tpu.memory_space<vmem>>, vector<1x4xf32>
    %cst_6 = arith.constant dense<0.000000e+00> : vector<1x4xf32>
    %12 = vector.multi_reduction <add>, %10, %cst_6 [2] : vector<1x4x256xf32> to vector<1x4xf32>
    %13 = arith.addf %11, %12 : vector<1x4xf32>
    %c0_7 = arith.constant 0 : index
    %c0_8 = arith.constant 0 : index
    %14 = vector.load %arg6[%c0_7, %c0_8] : memref<1x4xf32, #tpu.memory_space<vmem>>, vector<1x4xf32>
    tpu.vector_store %arg6[%c0_7, %c0_8], %13 {strides = array<i32>} : memref<1x4xf32, #tpu.memory_space<vmem>>, vector<1x4xf32>,
    %c0_i32_9 = arith.constant 0 : i32
    %15 = arith.cmpi eq, %arg2, %c0_i32_9 : i32
    %16 = arith.extui %15 : i1 to i32
    %c0_i32_10 = arith.constant 0 : i32
    %17 = arith.cmpi ne, %16, %c0_i32_10 : i32
    scf.if %17 {
      %c0_11 = arith.constant 0 : index
      %18 = memref.load %arg3[%c0_11] : memref<1xf32, #tpu.memory_space<smem>>
      %cst_12 = arith.constant 1.000000e+00 : f32
      %19 = arith.divf %cst_12, %18 : f32
      %c0_13 = arith.constant 0 : index
      %c0_14 = arith.constant 0 : index
      %20 = vector.load %arg6[%c0_13, %c0_14] : memref<1x4xf32, #tpu.memory_space<vmem>>, vector<1x4xf32>
      %cst_15 = arith.constant 3.906250e-03 : f32
      %21 = vector.broadcast %cst_15 : f32 to vector<1x4xf32>
      %22 = arith.mulf %20, %21 : vector<1x4xf32>
      %23 = math.log %22 : vector<1x4xf32>
      %24 = vector.broadcast %19 : f32 to vector<1x4xf32>
      %25 = arith.mulf %23, %24 : vector<1x4xf32>
      %26 = math.exp %25 : vector<1x4xf32>
      %27 = vector.shape_cast %26 : vector<1x4xf32> to vector<1x1x4xf32>
      %c0_16 = arith.constant 0 : index
      %c0_17 = arith.constant 0 : index
      %c0_18 = arith.constant 0 : index
      %28 = vector.load %arg5[%c0_16, %c0_17, %c0_18] : memref<1x1x4xf32, #tpu.memory_space<vmem>>, vector<1x1x4xf32>
      tpu.vector_store %arg5[%c0_16, %c0_17, %c0_18], %27 {strides = array<i32>} : memref<1x1x4xf32, #tpu.memory_space<vmem>>, vector<1x1x4xf32>,
    } else {
    }
    return
  }
  func.func @transform_0(%arg0: i32, %arg1: i32, %arg2: i32, %arg3: memref<1xf32, #tpu.memory_space<smem>>) -> (i32, i32, i32) {
    %c0_i32 = arith.constant 0 : i32
    return %arg0, %arg1, %arg2 : i32, i32, i32
  }
  func.func @transform_1(%arg0: i32, %arg1: i32, %arg2: i32, %arg3: memref<1xf32, #tpu.memory_space<smem>>) -> (i32, i32, i32) {
    %c0_i32 = arith.constant 0 : i32
    %c0_i32_0 = arith.constant 0 : i32
    return %arg0, %c0_i32, %arg1 : i32, i32, i32
  }
}

</mosaic_0001>

<bundles_post_ra>
// kernel: tpu_custom_call.1
= control target key start
LH: loop header
LB: loop body
LE: loop exit
PB: predicated region body
PF: predicated region fallthrough
CT: control target
= control target key end

     0   :  { %s774_s0 = inlined_call_operand.<no memory space> [shape: f32[1], index: 0, kind: input, shape index: {}]   ;;  %s775_s1 = inlined_call_operand.hbm [shape: f32[2,4,256], index: 1, kind: input, shape index: {}]   ;;  %s776_s2 = inlined_call_operand.hbm [shape: f32[2,1,4], index: 2, kind: output, shape index: {}]  }
   0x1   :  { %7 = sst [smem:[#allocation4]] %s774_s0 }
   0x2   :  { %8 = vsyncpa [#allocation6], 0 }
   0x3   :  { %10 = vsyncpa [#allocation6 + $0x1], 0 }
   0x4   :  { %11 = vsyncpa [#allocation7], 0 }
   0x5   :  { %13 = vsyncpa [#allocation7 + $0x1], 0  ;;  %s598_s11 = smov 0   ;;  %s600_s12 = smov 0  }
   0x6   :  { %s602_s13 = smov 0   ;;  %s604_s14 = smov 0  }
   0x7   :  { %s606_s15 = smov 0   ;;  %s608_s16 = smov 0  }
   0x8 LB: > { %s370_s0 = sadd.s32 4294967295, %s573_s16   ;;  %s371_s17 = sadd.s32 4294967294, %s573_s16   ;;  %s573_s16 = sphi %s608_s16, %s19_s16   ;;  %s569_s15 = sphi %s606_s15, %s792_s15   ;;  %s565_s14 = sphi %s604_s14, %s791_s14   ;;  %s561_s13 = sphi %s602_s13, %s790_s13   ;;  %s557_s12 = sphi %s600_s12, %s789_s12   ;;  %s553_s11 = sphi %s598_s11, %s788_s11  }
   0x9   : > { %s38_s18 = sadd.s32 1, %s569_s15  ;;  %s49_s19 = sadd.s32 1, %s561_s13 }
   0xa   : > { %p40_p0 = scmp.ge.s32.totalorder %s38_s18, 2  ;;  %p56_p1 = scmp.ne.s32.totalorder %s561_s13, %s557_s12 }
   0xb   : > { %p57_p2 = scmp.eq.s32.totalorder %s573_s16, 0  ;;  %p62_p3 = scmp.ne.s32.totalorder %s557_s12, %s553_s11 }
   0xc   : > { %s794_s18 = smov (%p40_p0, %s38_s18), 0  ;;  %p63_p5 = scmp.eq.s32.totalorder %s370_s0, 0 }
   0xd   : > { %p639_p4 = por %p57_p2, %p56_p1  ;;  %s42_s21 = ssub.s32 %s569_s15, %s794_s18 }
   0xe   : > { %p88_p6 = scmp.eq.s32.totalorder %s370_s0, 1  ;;  %p47_p7 = scmp.eq.s32.totalorder %s42_s21, 0 }
   0xf   : > { %p645_p8 = por %p63_p5, %p62_p3  ;;  %p94_p10 = scmp.eq.s32.totalorder %s371_s17, 1 }
  0x10   : > { %p649_p9 = por %p88_p6, %p56_p1  ;;  %p397_p13 = scmp.lt.s32.totalorder %s573_s16, 2 }
  0x11   : > { %s654_s24 = scalar_select %p47_p7, %s561_s13, %s49_s19  }
  0x12   : > { %s780_s23 = scalar_select %p649_p9, 1, 0 }
  0x13   : > { %p656_p11 = por %p94_p10, %p62_p3  ;;  %s114_s26 = sand.u32 1, %s561_s13  }
  0x14   : > { %s374_s27 = sshll.u32 %s114_s26, 3  ;;  %s382_s28 = sshll.u32 %s569_s15, 7 }
  0x15   : > { %s781_s25 = scalar_select %p656_p11, 1, 0 }
  0x16   : > { %s667_s3 = scalar_lea.hbm %s775_s1, %s382_s28  ;;  %s118_s4 = scalar_lea.vmem [#allocation5], %s374_s27 }
  0x17   : > { %s130_s5 = sshll.u32 %s118_s4, 4  ;;  %p673_p0 = pnand %p397_p13, %p639_p4  ;;  %s669_s5 = int_to_ptr.vmem [resolvable:$true] %s130_s5 }
  0x18   : > { %s115_s7 = scalar_lea.sflag [#allocation6], %s114_s26  ;;  %s461_s8 = scalar_lea.hbm %s667_s3, 128 }
  0x19   : > { %p462_p3 = scmp.ne.s32.totalorder %s667_s3, %s461_s8  ;;  %p463_p5 = pneg %p673_p0 }
  0x1a   : > { %s466_s0 = scalar_lea.hbm %s775_s1, 256  ;;  %p467_p4 = scmp.lt.u32.totalorder %s667_s3, %s775_s1 }
  0x1b   : > { %p464_p6 = pnand %p463_p5, %p462_p3  ;;  %p468_p10 = scmp.lt.u32.totalorder %s466_s0, %s461_s8 }
  0x1c   : > { %p470_p12 = scmp.lt.u32.totalorder %s461_s8, %s667_s3 }
  0x1d   : > { %p465_p7 = pneg %p464_p6  ;;  %p469_p13 = por %p468_p10, %p467_p4 }
  0x1f   : > { %p471_p1 = por %p470_p12, %p469_p13 }
  0x21   : > { %p472_p2 = pnand %p471_p1, %p465_p7 }
  0x23   : > { %475 = shalt.err (!%p472_p2)
}
  0x24   : > { %s476_s20 = scalar_lea.vmem %s669_s5, 128  ;;  %s575_s21 = smov [#allocation5]  }
  0x25   : > { %p477_p3 = scmp.ne.s32.totalorder %s669_s5, %s476_s20  ;;  %s481_s26 = sshll.u32 %s575_s21, 4  ;;  %s482_s26 = int_to_ptr.vmem [resolvable:$false] %s481_s26 }
  0x26   : > { %s483_s27 = scalar_lea.vmem %s482_s26, 256  ;;  %p484_p9 = scmp.lt.s32.totalorder %s669_s5, %s482_s26 }
  0x27   : > { %p479_p6 = pnand %p477_p3, %p463_p5  ;;  %p485_p4 = scmp.lt.s32.totalorder %s483_s27, %s476_s20 }
  0x29   : > { %p480_p11 = pneg %p479_p6  ;;  %p486_p10 = por %p485_p4, %p484_p9 }
  0x2b   : > { %p487_p12 = pnand %p486_p10, %p480_p11 }
  0x2d   : > { %490 = shalt.err (!%p487_p12)
}
  0x2e   : > { %392 = dma.hbm_to_vmem [thread:$0]  (!%p673_p0), %s667_s3, 128, %s669_s5, %s115_s7  }
  0x2f   : > { %p783_p1 = scmp.lt.s32.totalorder %s573_s16, 3  ;;  %p784_p2 = scmp.ge.s32.totalorder %s573_s16, 1 }
  0x31   : > { %p136_p5 = pnand %p784_p2, %p783_p1 }
  0x32   : > { %s709_s28 = sand.u32 (!%p136_p5), 1, %s557_s12  }
  0x33   : > { %139 = sbr.rel (%p136_p5) target bundleno = 435 (0x1b3), region = 24  ;;  %s378_s29 = sshll.u32 (!%p136_p5), %s709_s28, 3 }
  0x34   : > { %s142_s30 = scalar_lea.sflag (!%p136_p5), [#allocation6], %s709_s28  ;;  %s145_s4 = scalar_lea.vmem (!%p136_p5), [#allocation5], %s378_s29 }
  0x3a   : > { %544 = dma.done.wait (%p645_p8), %s142_s30, 128  }
  0x3b   : > { %546 = vsyncadd (%p645_p8), %s142_s30, 4294967168  ;;  %v170_v0 = vld [vmem:[%s145_s4] sm:$0xff]  ;;  %s172_s3 = sld [smem:[#allocation4]]  ;;  %vm183_vm0 = vcmask 1043456   ;;  %v576_v12 = vmov 0   ;;  %vm168_vm1 = vcmask 24576   ;;  %v190_v15 = vlaneseq }
  0x3c   : > { %v171_v1 = vmax.f32 %v170_v0, 1e-06  ;;  %450 = vset.pattern.permute.xlu0 %v576_v12  ;;  %v577_v13 = vmov 0.0   ;;  %v578_v16 = vmov 1966171168   ;;  %s379_s5 = sshll.u32 %s565_s14, 4 }
  0x3d   : > { %169 = vst.msk [vmem:[#allocation2] sm:$0x1] %vm168_vm1, %v577_v13  ;;  %v209_v17 = vunpack.c.l.s4 %v578_v16  ;;  %v191_v18 = vshrl.u32 %v190_v15, 7  ;;  %v234_v36 = vand.u32 127, %v190_v15  ;;  %s162_s6 = scalar_lea.vmem [#allocation8], %s709_s28  ;;  %s724_s10 = scalar_lea.hbm %s776_s2, %s379_s5 }
  0x3e   : > { %451 = vlog2.f32 %v171_v1  ;;  %s287_s7 = sshll.u32 %s162_s6, 4  ;;  %s274_s0 = scalar_lea.sflag [#allocation7], %s709_s28  ;;  %s726_s7 = int_to_ptr.vmem [resolvable:$true] %s287_s7 }
  0x3f   : > { %v210_v19 = vunpack.c.0.s8 %v209_v17  ;;  %v192_v20 = vsub.s32 0, %v191_v18  ;;  %v196_v21 = vsub.s32 1, %v191_v18  ;;  %v200_v22 = vsub.s32 2, %v191_v18  ;;  %s491_s17 = scalar_lea.vmem %s726_s7, 16  ;;  %p785_p9 = scmp.ne.s32.totalorder %s780_s23, 0 }
  0x40   : > { %v204_v23 = vsub.s32 3, %v191_v18  ;;  %v237_v37 = vsub.s32 %v234_v36, %v191_v18  ;;  %p492_p8 = scmp.ne.s32.totalorder %s726_s7, %s491_s17  ;;  %s579_s14 = smov [#allocation8]  }
  0x41   : > { %v175_v3 = vstv %s172_s3  ;;  %v213_v25 = vsub.s32 %v210_v19, %v191_v18  ;;  %s495_s19 = sshll.u32 %s579_s14, 4  ;;  %s496_s19 = int_to_ptr.vmem [resolvable:$false] %s495_s19 }
  0x42   : > { %p493_p11 = pnand %p492_p8, %p785_p9  ;;  %s497_s20 = scalar_lea.vmem %s496_s19, 32 }
  0x43   : > { %p498_p7 = scmp.lt.s32.totalorder %s726_s7, %s496_s19  ;;  %p499_p13 = scmp.lt.s32.totalorder %s497_s20, %s491_s17 }
  0x44   : > { %v179_v41 = vld [vmem:[#allocation2] sm:$0x1]  ;;  %p494_p0 = pneg %p493_p11 }
  0x45   : > { %p500_p3 = por %p499_p13, %p498_p7 }
  0x47   : > { %p501_p6 = pnand %p500_p3, %p494_p0 }
  0x48   : > { %v452_v2 = vpop.eup %451 }
  0x49   : > { %v174_v4 = vmul.f32 0.6931472, %v452_v2 }
  0x4b   : > { %v176_v5 = vmul.f32 %v175_v3, %v174_v4 }
  0x4d   : > { %v177_v6 = vmul.f32 1.442695, %v176_v5 }
  0x4f   : > { %453 = vpow2.f32 %v177_v6 }
  0x50   : > { %455 = vrcp.f32 %v175_v3 }
  0x59   : > { %v454_v7 = vpop.eup %453 }
  0x5a   : > { %v181_v8 = vcombine.high %v454_v7, %v454_v7  ;;  %v184_v9 = vsel %vm183_vm0, %v454_v7, 0.0  ;;  %v456_v14 = vpop.eup %455 }
  0x5b   : > { %383 = vpush %v456_v14 }
  0x5c   : > { %v185_v10 = vsel %vm183_vm0, %v181_v8, 0.0 }
  0x5d   : > { %v186_v11 = vadd.f32 %v185_v10, %v184_v9 }
  0x5f   : > { %187 = vadd.xlane.f32.xlu0 %v186_v11 }
  0x8c   : > { %s384_s22 = spop %383 }
  0x8d   : > { %v268_v47 = vstv %s384_s22 }
  0xec   : > { %v188_v24 = vpop.xlane.xlu0 %187 }
  0xed   : > { %v193_v26 = vrot.slane %v188_v24, %v192_v20  ;;  %v197_v27 = vrot.slane %v188_v24, %v196_v21  ;;  %v201_v28 = vrot.slane %v188_v24, %v200_v22  ;;  %v205_v29 = vrot.slane %v188_v24, %v204_v23 }
  0xef   : > { %v206_v30 = vcombine.low %v193_v26, %v197_v27  ;;  %v207_v31 = vcombine.low %v201_v28, %v205_v29 }
  0xf1   : > { %v214_v32 = vrot.slane %v206_v30, %v213_v25  ;;  %v221_v33 = vrot.slane %v207_v31, %v213_v25 }
  0xf3   : > { %v222_v34 = vcombine.low %v214_v32, %v221_v33 }
  0xf5   : > { %v229_v35 = vrot.slane %v222_v34, %v213_v25 }
  0xf7   : > { %231 = vperm.xlu0 %450, %v229_v35  }
 0x176   : > { %v232_v38 = vpop.permute.xlu0 %231 }
 0x177   : > { %v238_v39 = vrot.slane %v232_v38, %v237_v37 }
 0x179   : > { %v245_v40 = vrot.slane %v238_v39, %v213_v25 }
 0x17b   : > { %v252_v42 = vrot.slane %v245_v40, %v213_v25 }
 0x17d   : > { %v254_v43 = vadd.f32 %v252_v42, %v179_v41 }
 0x17f   : > { %256 = vst.msk [vmem:[#allocation2] sm:$0x1] %vm168_vm1, %v254_v43 }
 0x186   : > { %v264_v44 = vld [vmem:[#allocation2] sm:$0x1] }
 0x187   : > { %v265_v45 = vmul.f32 0.00390625, %v264_v44 }
 0x189   : > { %457 = vlog2.f32 %v265_v45 }
 0x193   : > { %v458_v46 = vpop.eup %457 }
 0x194   : > { %v267_v48 = vmul.f32 0.6931472, %v458_v46 }
 0x196   : > { %v269_v49 = vmul.f32 %v268_v47, %v267_v48 }
 0x198   : > { %v270_v50 = vmul.f32 1.442695, %v269_v49 }
 0x19a   : > { %459 = vpow2.f32 %v270_v50 }
 0x1a4   : > { %v460_v51 = vpop.eup %459 }
 0x1a5   : > { %272 = vst.msk [vmem:[%s162_s6] sm:$0x1] %vm168_vm1, %v460_v51 }
 0x1a6   : > { %504 = shalt.err (!%p501_p6)
}
 0x1a7   : > { %s505_s21 = scalar_lea.hbm %s724_s10, 16  ;;  %s509_s28 = scalar_lea.hbm %s776_s2, 32 }
 0x1a8   : > { %p506_p4 = scmp.ne.s32.totalorder %s724_s10, %s505_s21  ;;  %p510_p1 = scmp.lt.u32.totalorder %s724_s10, %s776_s2 }
 0x1a9   : > { %p511_p2 = scmp.lt.u32.totalorder %s509_s28, %s505_s21  ;;  %p513_p8 = scmp.lt.u32.totalorder %s505_s21, %s724_s10 }
 0x1aa   : > { %p507_p10 = pnand %p506_p4, %p785_p9 }
 0x1ab   : > { %p512_p5 = por %p511_p2, %p510_p1 }
 0x1ac   : > { %p508_p12 = pneg %p507_p10 }
 0x1ad   : > { %p514_p11 = por %p513_p8, %p512_p5 }
 0x1af   : > { %p515_p0 = pnand %p514_p11, %p508_p12 }
 0x1b1   : > { %518 = shalt.err (!%p515_p0)
}
 0x1b2   : > { %387 = dma.vmem_to_hbm [thread:$0]  (%p785_p9), %s726_s7, 16, %s724_s10, %s274_s0  }
 0x1b3 PF: > { %s299_s4 = sand.u32 1, %s553_s11   ;;  %p786_p7 = scmp.ne.s32.totalorder %s781_s25, 0 }
 0x1b4   : > { %p787_p13 = scmp.ge.s32.totalorder %s573_s16, 2  ;;  %s300_s3 = scalar_lea.sflag [#allocation7], %s299_s4 }
 0x1b6   : > { %p394_p3 = pnand %p787_p13, %p786_p7 }
 0x1b8   : > { %548 = dma.done.wait (!%p394_p3), %s300_s3, 16  }
 0x1b9   : > { %550 = vsyncadd (!%p394_p3), %s300_s3, 4294967280  ;;  %s19_s16 = sadd.s32 1, %s573_s16   ;;  %s788_s11 = smov %s557_s12 }
 0x1ba   : > { %p16_p6 = scmp.ge.s32.totalorder %s19_s16, 4   ;;  %s789_s12 = smov %s561_s13 }
 0x1bb   : > { %s790_s13 = smov %s654_s24  ;;  %s791_s14 = smov %s569_s15 }
 0x1bc   : > { %s792_s15 = smov %s794_s18  ;;  %18 = sbr.rel (!%p16_p6) target bundleno = 8 (0x8), region = 77 }
 0x1c3   :  { %304 = vsyncpa [#allocation6], 1 }
 0x1c4   :  { %306 = vsyncpa [#allocation6 + $0x1], 1 }
 0x1c5   :  { %307 = vsyncpa [#allocation7], 1 }
 0x1c6   :  { %309 = vsyncpa [#allocation7 + $0x1], 1 }

</bundles_post_ra>
